<compile_context>
chip_gen: v5e
topology: v5e:2x2
jax: 0.10.0
libtpu: 0.0.40
codegen_flags: <defaults>
</compile_context>

<pallas_src>
import functools

import jax
import jax.numpy as jnp
from jax.experimental import pallas as pl
from jax.experimental.pallas import tpu as pltpu


def add_norm_kernel(x_ref, y_ref, g_ref, b_ref, o_ref, *, eps):
    # x_ref, y_ref: (tm, D) row tiles (residual input X, sublayer output Y).
    # g_ref, b_ref: (1, D) LayerNorm affine params (broadcast over rows).
    # TODO(synk): training-mode dropout (random mask via pltpu.prng_*) not
    # implemented; eval-mode dropout is the identity.
    z = x_ref[...].astype(jnp.float32) + y_ref[...].astype(jnp.float32)
    mean = jnp.mean(z, axis=-1, keepdims=True)
    zc = z - mean
    var = jnp.mean(zc * zc, axis=-1, keepdims=True)
    inv = jax.lax.rsqrt(var + eps)                       # EUP slot, ~free
    out = zc * inv * g_ref[...].astype(jnp.float32) + b_ref[...].astype(jnp.float32)
    o_ref[...] = out.astype(o_ref.dtype)


def _round_up(v, m):
    return (v + m - 1) // m * m


def add_norm(x, y, gamma, beta, *, eps=1e-5, tm=None):
    """AddNorm forward: LayerNorm over the last axis of (x + y).

    x, y: (..., D); gamma, beta: (D,).
    """
    assert x.shape == y.shape, "X and Y must have the same shape"
    d = x.shape[-1]
    lead = x.shape[:-1]
    m = 1
    for s in lead:
        m *= s

    x2 = x.reshape(m, d)
    y2 = y.reshape(m, d)

    # Row tile: largest multiple of the sublane pack (8 for f32, 16 for bf16)
    # up to 256 rows; for small M this collapses to a single grid step.
    pack = 16 if x.dtype == jnp.bfloat16 else 8
    if tm is None:
        tm = min(256, _round_up(m, pack))
    tm = max(pack, _round_up(tm, pack))

    # Pad rows instead of asserting divisibility; padded rows are sliced off.
    m_pad = _round_up(m, tm)
    if m_pad != m:
        x2 = jnp.pad(x2, ((0, m_pad - m), (0, 0)))
        y2 = jnp.pad(y2, ((0, m_pad - m), (0, 0)))

    g2 = gamma.reshape(1, d)
    b2 = beta.reshape(1, d)

    # VMEM budget: 2 double-buffered input tiles + double-buffered output tile
    # + params + headroom.
    itemsize = jnp.dtype(x.dtype).itemsize
    tile_bytes = tm * d * itemsize
    vmem_bytes = int(min(max(6 * tile_bytes + 4 * d * 4 + (1 << 20), 4 << 20),
                         100 << 20))

    cost = pl.CostEstimate(
        flops=8 * m_pad * d,                 # add, center, square, scale, affine
        transcendentals=m_pad,               # one rsqrt per row
        bytes_accessed=3 * m_pad * d * itemsize + 2 * d * 4,
    )

    out = pl.pallas_call(
        functools.partial(add_norm_kernel, eps=eps),
        out_shape=jax.ShapeDtypeStruct((m_pad, d), x.dtype),
        grid_spec=pltpu.PrefetchScalarGridSpec(
            num_scalar_prefetch=0,
            grid=(m_pad // tm,),
            in_specs=[
                pl.BlockSpec((tm, d), lambda i: (i, 0)),   # X rows
                pl.BlockSpec((tm, d), lambda i: (i, 0)),   # Y rows
                pl.BlockSpec((1, d), lambda i: (0, 0)),    # gamma (resident)
                pl.BlockSpec((1, d), lambda i: (0, 0)),    # beta  (resident)
            ],
            out_specs=pl.BlockSpec((tm, d), lambda i: (i, 0)),
        ),
        compiler_params=pltpu.CompilerParams(
            dimension_semantics=("parallel",),            # shards over v7x 2 TCs
            vmem_limit_bytes=vmem_bytes,
        ),
        cost_estimate=cost,
    )(x2, y2, g2, b2)

    if m_pad != m:
        out = out[:m]
    return out.reshape(*lead, d)


if __name__ == "__main__":
    # Small shapes consistent with the module; feature dim chosen lane-dense
    # (multiple of 128) per the performance review.
    batch, seq, hidden = 2, 8, 128
    eps = 1e-5  # torch nn.LayerNorm default

    key = jax.random.PRNGKey(0)
    kx, ky, kg, kb = jax.random.split(key, 4)

    x = jax.random.normal(kx, (batch, seq, hidden), dtype=jnp.float32)
    y = jax.random.normal(ky, (batch, seq, hidden), dtype=jnp.float32)
    # LayerNorm affine params (torch init is ones/zeros; perturb to exercise them).
    gamma = 1.0 + 0.1 * jax.random.normal(kg, (hidden,), dtype=jnp.float32)
    beta = 0.1 * jax.random.normal(kb, (hidden,), dtype=jnp.float32)

    out = add_norm(x, y, gamma, beta, eps=eps)
    out = jax.block_until_ready(out)

    # Pure-JAX reference: LayerNorm(dropout(Y) + X), dropout = identity (eval).
    z = y + x
    mean = jnp.mean(z, axis=-1, keepdims=True)
    var = jnp.mean((z - mean) ** 2, axis=-1, keepdims=True)
    ref = (z - mean) * jax.lax.rsqrt(var + eps) * gamma + beta

    assert out.shape == (batch, seq, hidden)
    assert jnp.allclose(out, ref, atol=1e-5, rtol=1e-5)

    print("KERNEL_OK")
</pallas_src>

<mosaic_0001>
module attributes {stable_mosaic.version = 11 : i64} {
  func.func @add_norm_kernel(%arg0: i32, %arg1: memref<16x128xf32, #tpu.memory_space<vmem>>, %arg2: memref<16x128xf32, #tpu.memory_space<vmem>>, %arg3: memref<1x128xf32, #tpu.memory_space<vmem>>, %arg4: memref<1x128xf32, #tpu.memory_space<vmem>>, %arg5: memref<16x128xf32, #tpu.memory_space<vmem>>) attributes {dimension_semantics = [#tpu.dimension_semantics<parallel>], iteration_bounds = array<i64: 1>, scalar_prefetch = 0 : i64, scratch_operands = 0 : i64, tpu.core_type = #tpu.core_type<tc>, window_params = [{transform_indices = @transform_0, window_bounds = array<i64: 16, 128>}, {transform_indices = @transform_1, window_bounds = array<i64: 16, 128>}, {pipeline_mode = #tpu.pipeline_mode<synchronous>, transform_indices = @transform_2, window_bounds = array<i64: 1, 128>}, {pipeline_mode = #tpu.pipeline_mode<synchronous>, transform_indices = @transform_3, window_bounds = array<i64: 1, 128>}, {transform_indices = @transform_4, window_bounds = array<i64: 16, 128>}]} {
    %c0 = arith.constant 0 : index
    %c0_0 = arith.constant 0 : index
    %0 = vector.load %arg1[%c0, %c0_0] : memref<16x128xf32, #tpu.memory_space<vmem>>, vector<16x128xf32>
    %c0_1 = arith.constant 0 : index
    %c0_2 = arith.constant 0 : index
    %1 = vector.load %arg2[%c0_1, %c0_2] : memref<16x128xf32, #tpu.memory_space<vmem>>, vector<16x128xf32>
    %2 = arith.addf %0, %1 : vector<16x128xf32>
    %cst = arith.constant dense<0.000000e+00> : vector<16xf32>
    %3 = vector.multi_reduction <add>, %2, %cst [1] : vector<16x128xf32> to vector<16xf32>
    %4 = vector.shape_cast %3 : vector<16xf32> to vector<16x1xf32>
    %cst_3 = arith.constant 1.280000e+02 : f32
    %5 = vector.broadcast %cst_3 : f32 to vector<16x1xf32>
    %6 = arith.divf %4, %5 : vector<16x1xf32>
    %7 = vector.broadcast %6 : vector<16x1xf32> to vector<16x128xf32>
    %8 = arith.subf %2, %7 : vector<16x128xf32>
    %9 = arith.mulf %8, %8 : vector<16x128xf32>
    %cst_4 = arith.constant dense<0.000000e+00> : vector<16xf32>
    %10 = vector.multi_reduction <add>, %9, %cst_4 [1] : vector<16x128xf32> to vector<16xf32>
    %11 = vector.shape_cast %10 : vector<16xf32> to vector<16x1xf32>
    %cst_5 = arith.constant 1.280000e+02 : f32
    %12 = vector.broadcast %cst_5 : f32 to vector<16x1xf32>
    %13 = arith.divf %11, %12 : vector<16x1xf32>
    %cst_6 = arith.constant 9.99999974E-6 : f32
    %14 = vector.broadcast %cst_6 : f32 to vector<16x1xf32>
    %15 = arith.addf %13, %14 : vector<16x1xf32>
    %16 = math.rsqrt %15 : vector<16x1xf32>
    %17 = vector.broadcast %16 : vector<16x1xf32> to vector<16x128xf32>
    %18 = arith.mulf %8, %17 : vector<16x128xf32>
    %c0_7 = arith.constant 0 : index
    %c0_8 = arith.constant 0 : index
    %19 = vector.load %arg3[%c0_7, %c0_8] : memref<1x128xf32, #tpu.memory_space<vmem>>, vector<1x128xf32>
    %20 = vector.broadcast %19 : vector<1x128xf32> to vector<16x128xf32>
    %21 = arith.mulf %18, %20 : vector<16x128xf32>
    %c0_9 = arith.constant 0 : index
    %c0_10 = arith.constant 0 : index
    %22 = vector.load %arg4[%c0_9, %c0_10] : memref<1x128xf32, #tpu.memory_space<vmem>>, vector<1x128xf32>
    %23 = vector.broadcast %22 : vector<1x128xf32> to vector<16x128xf32>
    %24 = arith.addf %21, %23 : vector<16x128xf32>
    %c0_11 = arith.constant 0 : index
    %c0_12 = arith.constant 0 : index
    %25 = vector.load %arg5[%c0_11, %c0_12] : memref<16x128xf32, #tpu.memory_space<vmem>>, vector<16x128xf32>
    tpu.vector_store %arg5[%c0_11, %c0_12], %24 {strides = array<i32>} : memref<16x128xf32, #tpu.memory_space<vmem>>, vector<16x128xf32>,
    return
  }
  func.func @transform_0(%arg0: i32) -> (i32, i32) {
    %c0_i32 = arith.constant 0 : i32
    %c0_i32_0 = arith.constant 0 : i32
    return %arg0, %c0_i32 : i32, i32
  }
  func.func @transform_1(%arg0: i32) -> (i32, i32) {
    %c0_i32 = arith.constant 0 : i32
    %c0_i32_0 = arith.constant 0 : i32
    return %arg0, %c0_i32 : i32, i32
  }
  func.func @transform_2(%arg0: i32) -> (i32, i32) {
    %c0_i32 = arith.constant 0 : i32
    %c0_i32_0 = arith.constant 0 : i32
    %c0_i32_1 = arith.constant 0 : i32
    return %c0_i32, %c0_i32_0 : i32, i32
  }
  func.func @transform_3(%arg0: i32) -> (i32, i32) {
    %c0_i32 = arith.constant 0 : i32
    %c0_i32_0 = arith.constant 0 : i32
    %c0_i32_1 = arith.constant 0 : i32
    return %c0_i32, %c0_i32_0 : i32, i32
  }
  func.func @transform_4(%arg0: i32) -> (i32, i32) {
    %c0_i32 = arith.constant 0 : i32
    %c0_i32_0 = arith.constant 0 : i32
    return %arg0, %c0_i32 : i32, i32
  }
}

</mosaic_0001>

<bundles_post_ra>
// kernel: tpu_custom_call.1
= control target key start
LH: loop header
LB: loop body
LE: loop exit
PB: predicated region body
PF: predicated region fallthrough
CT: control target
= control target key end

     0   :  { %9 = vsyncpa [#allocation3], 0  ;;  %s284_s0 = inlined_call_operand.hbm [shape: f32[16,128], index: 0, kind: input, shape index: {}]   ;;  %s285_s1 = inlined_call_operand.hbm [shape: f32[16,128], index: 1, kind: input, shape index: {}]   ;;  %s286_s2 = inlined_call_operand.vmem [shape: f32[1,128], index: 2, kind: input, shape index: {}]   ;;  %s287_s3 = inlined_call_operand.vmem [shape: f32[1,128], index: 3, kind: input, shape index: {}]   ;;  %s288_s4 = inlined_call_operand.hbm [shape: f32[16,128], index: 4, kind: output, shape index: {}]  }
   0x1   :  { %10 = vsyncpa [#allocation6], 0 }
   0x2   :  { %11 = vsyncpa [#allocation4], 0  ;;  %s16_s17 = sshll.u32 %s284_s0, 4  ;;  %s229_s18 = smov [#allocation2]   ;;  %s17_s17 = int_to_ptr.hbm [resolvable:$true] %s16_s17 }
   0x3   :  { %s18_s19 = sshll.u32 %s229_s18, 4  ;;  %s29_s22 = sshll.u32 %s285_s1, 4  ;;  %s19_s19 = int_to_ptr.vmem [resolvable:$true] %s18_s19  ;;  %s30_s22 = int_to_ptr.hbm [resolvable:$true] %s29_s22 }
   0x4   :  { %s230_s23 = smov 128   ;;  %s231_s24 = smov 8  }
   0x5   :  { %24 = dma.hbm_to_vmem [thread:$0]  %s17_s17, 256, %s19_s19, [#allocation3], %s230_s23, %s230_s23, %s231_s24  }
   0x6   :  { %s232_s25 = smov [#allocation5]  }
   0x7   :  { %s31_s26 = sshll.u32 %s232_s25, 4  ;;  %s32_s26 = int_to_ptr.vmem [resolvable:$true] %s31_s26 }
   0x8   :  { %37 = dma.hbm_to_vmem [thread:$0]  %s30_s22, 256, %s32_s26, [#allocation6], %s230_s23, %s230_s23, %s231_s24  }
   0x9   :  { %223 = dma.done.wait [#allocation3], 256  }
   0xa   :  { %224 = vsyncadd [#allocation3], 4294967040 }
   0xb   :  { %225 = dma.done.wait [#allocation6], 256  }
   0xc   :  { %226 = vsyncadd [#allocation6], 4294967040  ;;  %v50_v0 = vld [vmem:[#allocation2] sm:$0xff]  ;;  %v52_v1 = vld [vmem:[#allocation5] sm:$0xff]  ;;  %v233_v6 = vmov 128.0   ;;  %s234_s29 = smov [#allocation7]  }
   0xd   :  { %v54_v2 = vadd.f32 %v52_v1, %v50_v0  ;;  %v51_v3 = vld [vmem:[#allocation2 + $0x8] sm:$0xff]  ;;  %v53_v4 = vld [vmem:[#allocation5 + $0x8] sm:$0xff]  ;;  %145 = vrcp.f32 %v233_v6  ;;  %v143_v35 = vld [vmem:[%s286_s2] ss:$0 sm:$0xff]  ;;  %s121_s2 = sshll.u32 %s234_s29, 4  ;;  %s123_s6 = sshll.u32 %s288_s4, 4  ;;  %s122_s2 = int_to_ptr.vmem [resolvable:$true] %s121_s2  ;;  %s124_s6 = int_to_ptr.hbm [resolvable:$true] %s123_s6 }
   0xe   :  { %v55_v5 = vadd.f32 %v53_v4, %v51_v3  ;;  %v144_v39 = vld [vmem:[%s287_s3] ss:$0 sm:$0xff] }
   0xf   :  { %56 = vadd.xlane.f32.xlu0 %v54_v2 }
  0x13   :  { %v146_v7 = vpop.eup %145 }
  0x14   :  { %v61_v8 = vmul.f32 128.0, %v146_v7  ;;  %vm65_vm0 = vweird.f32 %v146_v7 }
  0x16   :  { %v62_v9 = vsub.f32 1.0, %v61_v8 }
  0x17   :  { %58 = vadd.xlane.f32.xlu0 %v55_v5 }
  0x18   :  { %v63_v10 = vmul.f32 %v146_v7, %v62_v9 }
  0x1a   :  { %v64_v11 = vadd.f32 %v146_v7, %v63_v10 }
  0x1c   :  { %v66_v12 = vsel %vm65_vm0, %v146_v7, %v64_v11 }
  0x82   :  { %v57_v13 = vpop.xlane.xlu0 %56 }
  0x83   :  { %v67_v14 = vmul.f32 %v66_v12, %v57_v13 }
  0x85   :  { %v69_v15 = vsub.f32 %v54_v2, %v67_v14 }
  0x87   :  { %v71_v16 = vmul.f32 %v69_v15, %v69_v15 }
  0x89   :  { %73 = vadd.xlane.f32.xlu1 %v71_v16 }
  0x8a   :  { %v59_v17 = vpop.xlane.xlu0 %58 }
  0x8b   :  { %v68_v18 = vmul.f32 %v66_v12, %v59_v17 }
  0x8d   :  { %v70_v19 = vsub.f32 %v55_v5, %v68_v18 }
  0x8f   :  { %v72_v20 = vmul.f32 %v70_v19, %v70_v19 }
  0x91   :  { %75 = vadd.xlane.f32.xlu1 %v72_v20 }
  0xfc   :  { %v74_v21 = vpop.xlane.xlu1 %73 }
  0xfd   :  { %v77_v22 = vmul.f32 %v74_v21, %v66_v12 }
  0xff   :  { %v79_v23 = vadd.f32 1e-05, %v77_v22 }
 0x101   :  { %147 = vrsqrt.f32 %v79_v23  ;;  %vm87_vm2 = vweird.f32 %v79_v23 }
 0x104   :  { %v76_v24 = vpop.xlane.xlu1 %75 }
 0x105   :  { %v78_v25 = vmul.f32 %v76_v24, %v66_v12 }
 0x107   :  { %v148_v26 = vpop.eup %147  ;;  %v80_v27 = vadd.f32 1e-05, %v78_v25 }
 0x108   :  { %v82_v28 = vmul.f32 %v148_v26, %v79_v23  ;;  %vm88_vm1 = vweird.f32 %v148_v26 }
 0x109   :  { %149 = vrsqrt.f32 %v80_v27  ;;  %vm89_vm3 = vmor %vm87_vm2, %vm88_vm1  ;;  %vm97_vm5 = vweird.f32 %v80_v27 }
 0x10a   :  { %v83_v29 = vmul.f32 %v148_v26, %v82_v28 }
 0x10c   :  { %v84_v30 = vmul.f32 0.5, %v83_v29 }
 0x10e   :  { %v85_v31 = vsub.f32 1.5, %v84_v30 }
 0x10f   :  { %v150_v32 = vpop.eup %149 }
 0x110   :  { %v86_v33 = vmul.f32 %v148_v26, %v85_v31  ;;  %v92_v34 = vmul.f32 %v150_v32, %v80_v27  ;;  %vm98_vm4 = vweird.f32 %v150_v32 }
 0x111   :  { %vm99_vm6 = vmor %vm97_vm5, %vm98_vm4 }
 0x112   :  { %v90_v36 = vsel %vm89_vm3, %v148_v26, %v86_v33  ;;  %v93_v37 = vmul.f32 %v150_v32, %v92_v34 }
 0x113   :  { %v101_v38 = vmul.f32 %v90_v36, %v69_v15 }
 0x114   :  { %v94_v40 = vmul.f32 0.5, %v93_v37 }
 0x115   :  { %v107_v41 = vmul.f32 %v143_v35, %v101_v38 }
 0x116   :  { %v95_v42 = vsub.f32 1.5, %v94_v40 }
 0x117   :  { %v113_v43 = vadd.f32 %v144_v39, %v107_v41 }
 0x118   :  { %v96_v44 = vmul.f32 %v150_v32, %v95_v42 }
 0x119   :  { %115 = vst [vmem:[#allocation7] sm:$0xff] %v113_v43 }
 0x11a   :  { %v100_v45 = vsel %vm99_vm6, %v150_v32, %v96_v44 }
 0x11b   :  { %v102_v46 = vmul.f32 %v100_v45, %v70_v19 }
 0x11d   :  { %v108_v47 = vmul.f32 %v143_v35, %v102_v46 }
 0x11f   :  { %v114_v48 = vadd.f32 %v144_v39, %v108_v47 }
 0x121   :  { %116 = vst [vmem:[#allocation7 + $0x8] sm:$0xff] %v114_v48 }
 0x122   :  { %129 = dma.vmem_to_hbm [thread:$0]  %s122_s2, 256, %s124_s6, [#allocation4], %s230_s23, %s230_s23, %s231_s24  }
 0x123   :  { %227 = dma.done.wait [#allocation4], 256  }
 0x124   :  { %228 = vsyncadd [#allocation4], 4294967040 }
 0x125   :  { %134 = vsyncpa [#allocation3], 1 }
 0x126   :  { %135 = vsyncpa [#allocation6], 1 }
 0x127   :  { %136 = vsyncpa [#allocation4], 1 }

</bundles_post_ra>
